<compile_context>
chip_gen: v7x
topology: tpu7x:2x2x1
jax: 0.10.0
libtpu: 0.0.40
codegen_flags: <defaults>
</compile_context>

<pallas_src>
import functools

import jax
import jax.numpy as jnp
import numpy as np
from jax.experimental import pallas as pl
from jax.experimental.pallas import tpu as pltpu


def _round_up(v, m):
    return ((v + m - 1) // m) * m


def _scoped_vmem_cap_bytes():
    """~75% of physical VMEM: ~96 MiB on 128-MiB v5e/v6e, ~48 MiB on 64-MiB v7x."""
    phys = 64 * 1024 * 1024
    try:
        info = pltpu.get_tpu_info()
        phys = int(getattr(info, "vmem_capacity_bytes", phys))
    except Exception:
        pass
    return max(32 * 1024 * 1024, (phys * 3) // 4)


def _coo_to_ell(rows, cols, vals, n_out):
    """COO (duplicate-summing, like torch.sparse_coo_tensor) -> padded ELL,
    stored transposed as [nnz_max, n_out] so a (nnz, tn) block is lane-dense."""
    rows = np.asarray(rows, dtype=np.int64)
    cols = np.asarray(cols, dtype=np.int64)
    vals = np.asarray(vals, dtype=np.float32)
    counts = np.bincount(rows, minlength=n_out) if rows.size else np.zeros(n_out, np.int64)
    nnz_max = max(int(counts.max()) if counts.size else 1, 1)
    col_t = np.zeros((nnz_max, n_out), dtype=np.int32)
    w_t = np.zeros((nnz_max, n_out), dtype=np.float32)   # padded slots: weight 0
    slot = np.zeros(n_out, dtype=np.int64)
    for r, c, v in zip(rows, cols, vals):
        s = slot[r]
        col_t[s, r] = c
        w_t[s, r] = v
        slot[r] = s + 1
    return col_t, w_t, nnz_max


def _ell_regrid_kernel(col_ref, w_ref, x_ref, o_ref, *, tk, nnz):
    # grid = (i: row blocks of B*C, j: output-cell blocks, k: input-cell blocks)
    k = pl.program_id(2)

    cols = col_ref[...]                      # (nnz, tn) int32: global input-cell ids
    wts = w_ref[...]                         # (nnz, tn) f32: weights (0 on padding)
    tn = cols.shape[1]

    # On-the-fly dense M tile for this (j, k) block: M never streams from HBM.
    gcol = jax.lax.broadcasted_iota(jnp.int32, (tk, tn), 0) + k * tk
    m_tile = jnp.zeros((tk, tn), jnp.float32)
    for t in range(nnz):                     # nnz ~ 4: static unroll on the VPU
        m_tile += jnp.where(gcol == cols[t:t + 1, :], wts[t:t + 1, :], 0.0)
    m_tile = m_tile.astype(jnp.bfloat16)

    if x_ref.shape[1] == tk:                 # X streamed as (tm, tk) tiles
        x_tile = x_ref[...]
    else:                                    # X row block resident: slice the k chunk
        start = pl.multiple_of(k * tk, tk)
        x_tile = x_ref[:, pl.ds(start, tk)]

    part = jnp.dot(x_tile, m_tile, preferred_element_type=jnp.float32)

    @pl.when(k == 0)
    def _():
        o_ref[...] = part                    # direct write: no zero-init pass

    @pl.when(k > 0)
    def _():
        o_ref[...] += part


class TempestRegridderPallas:
    """Pallas TPU port of TempestRegridder.forward.

    Takes the sparse regrid map as COO (row, col, val) — what the netCDF map
    file provides — plus the output lat/lon sizes and the input grid size.
    All map preprocessing is done once here (hoisted out of the call path)."""

    def __init__(self, rows, cols, vals, lat_size, lon_size, n_in, *, tn=None, tk=None):
        self.lat_size = int(lat_size)
        self.lon_size = int(lon_size)
        self.n_out = self.lat_size * self.lon_size
        self.n_in = int(n_in)

        col_t, w_t, nnz = _coo_to_ell(rows, cols, vals, self.n_out)
        assert col_t.size == 0 or int(col_t.max()) < self.n_in
        self.nnz = nnz

        # Lane-dense output tile and contraction tile (multiples of 128).
        # TODO(synk): for v7x megacore keep >= 2*num_cores j blocks when small
        # problems make round_up(n_out, 128) // tn tiny.
        self.tn = tn if tn is not None else min(2048, _round_up(self.n_out, 128))
        self.tk = tk if tk is not None else min(1024, _round_up(self.n_in, 128))
        self.n_out_p = _round_up(self.n_out, self.tn)
        self.n_in_p = _round_up(self.n_in, self.tk)

        if self.n_out_p != self.n_out:
            pad = self.n_out_p - self.n_out
            col_t = np.pad(col_t, ((0, 0), (0, pad)))   # idx 0 + weight 0 => no-op rows
            w_t = np.pad(w_t, ((0, 0), (0, pad)))
        self.col_t = jnp.asarray(col_t)                 # [nnz, n_out_p] int32
        self.w_t = jnp.asarray(w_t)                     # [nnz, n_out_p] f32

        self._vmem_cap = _scoped_vmem_cap_bytes()

    def __call__(self, x):
        B, C, H, W = x.shape
        assert H * W == self.n_in, "input grid does not match the regrid map"
        BC = B * C
        tn, tk = self.tn, self.tk

        # bf16 streams halve HBM traffic; bf16 sublane tile => tm multiple of 16.
        tm = min(256, _round_up(BC, 16))
        BCp = _round_up(BC, tm)

        x2 = x.reshape(BC, self.n_in).astype(jnp.bfloat16)
        if (BCp, self.n_in_p) != (BC, self.n_in):
            x2 = jnp.pad(x2, ((0, BCp - BC), (0, self.n_in_p - self.n_in)))

        # Keep the whole X row block VMEM-resident across j/k when it fits;
        # otherwise stream (tm, tk) tiles.
        x_resident = 2 * tm * self.n_in_p * 2 <= 16 * 1024 * 1024
        if x_resident:
            x_spec = pl.BlockSpec((tm, self.n_in_p), lambda i, j, k: (i, 0))
            x_bytes = 2 * tm * self.n_in_p * 2
        else:
            x_spec = pl.BlockSpec((tm, tk), lambda i, j, k: (i, k))
            x_bytes = 2 * tm * tk * 2

        grid = (BCp // tm, self.n_out_p // tn, self.n_in_p // tk)

        est = (x_bytes
               + 2 * 2 * self.nnz * tn * 4          # col + weight blocks (double-buffered)
               + 2 * tm * tn * 4                    # resident f32 output block
               + tk * tn * 6)                       # on-the-fly M tile (f32 + bf16 copy)
        vmem_limit = int(min(max(2 * est, 32 * 1024 * 1024), self._vmem_cap))

        kernel = functools.partial(_ell_regrid_kernel, tk=tk, nnz=self.nnz)

        y2p = pl.pallas_call(
            kernel,
            out_shape=jax.ShapeDtypeStruct((BCp, self.n_out_p), jnp.float32),
            grid_spec=pltpu.PrefetchScalarGridSpec(
                num_scalar_prefetch=0,
                grid=grid,
                in_specs=[
                    pl.BlockSpec((self.nnz, tn), lambda i, j, k: (0, j)),  # ELL cols
                    pl.BlockSpec((self.nnz, tn), lambda i, j, k: (0, j)),  # ELL weights
                    x_spec,                                                # X rows
                ],
                out_specs=pl.BlockSpec((tm, tn), lambda i, j, k: (i, j)),
            ),
            compiler_params=pltpu.CompilerParams(
                dimension_semantics=("parallel", "parallel", "arbitrary"),
                vmem_limit_bytes=vmem_limit,
            ),
        )(self.col_t, self.w_t, x2)

        return y2p[:BC, :self.n_out].reshape(B, C, self.lat_size, self.lon_size)


def make_synthetic_coo(n_out, n_in, nnz_per_row=4):
    """Deterministic synthetic sparse regrid map (like Tempest overlap weights)
    in COO form: each output cell averages a few input cells."""
    w = np.array([0.4, 0.3, 0.2, 0.1], dtype=np.float32)[:nnz_per_row]
    rows = np.repeat(np.arange(n_out, dtype=np.int64), nnz_per_row)
    cols = np.array([(o * 7 + 3 * t + 1) % n_in
                     for o in range(n_out) for t in range(nnz_per_row)], dtype=np.int64)
    vals = np.tile(w, n_out)
    return rows, cols, vals


if __name__ == "__main__":
    key = jax.random.PRNGKey(0)

    # Input grid: 16 x 16  -> Nin = 256.  Output grid: lat=8, lon=16 -> Nout = 128.
    B, C, Hin, Win = 2, 4, 16, 16
    lat_out, lon_out = 8, 16
    n_in = Hin * Win
    n_out = lat_out * lon_out

    rows, cols, vals = make_synthetic_coo(n_out, n_in, nnz_per_row=4)
    regridder = TempestRegridderPallas(rows, cols, vals, lat_out, lon_out, n_in)

    x = jax.random.normal(key, (B, C, Hin, Win), dtype=jnp.float32)
    y = jax.block_until_ready(regridder(x))

    # Reference: dense M from the same COO map, full f32: (x reshaped) @ M.T.
    M_dense = np.zeros((n_out, n_in), dtype=np.float32)
    np.add.at(M_dense, (rows, cols), vals)
    y_ref = (np.asarray(x).reshape(B * C, n_in) @ M_dense.T).reshape(B, C, lat_out, lon_out)

    assert y.shape == (B, C, lat_out, lon_out)
    # bf16 input/weight streams with f32 accumulation -> ~1e-3 relative error.
    np.testing.assert_allclose(np.asarray(y), y_ref, rtol=2e-2, atol=2e-2)
    print("KERNEL_OK")
</pallas_src>

<mosaic_0001>
module attributes {stable_mosaic.version = 11 : i64} {
  func.func @_ell_regrid_kernel(%arg0: i32, %arg1: i32, %arg2: i32, %arg3: memref<4x128xi32, #tpu.memory_space<vmem>>, %arg4: memref<4x128xf32, #tpu.memory_space<vmem>>, %arg5: memref<16x256xbf16, #tpu.memory_space<vmem>>, %arg6: memref<16x128xf32, #tpu.memory_space<vmem>>) attributes {dimension_semantics = [#tpu.dimension_semantics<parallel>, #tpu.dimension_semantics<parallel>, #tpu.dimension_semantics<arbitrary>], iteration_bounds = array<i64: 1, 1, 1>, scalar_prefetch = 0 : i64, scratch_operands = 0 : i64, tpu.core_type = #tpu.core_type<tc>, window_params = [{transform_indices = @transform_0, window_bounds = array<i64: 4, 128>}, {transform_indices = @transform_1, window_bounds = array<i64: 4, 128>}, {transform_indices = @transform_2, window_bounds = array<i64: 16, 256>}, {transform_indices = @transform_3, window_bounds = array<i64: 16, 128>}]} {
    %c0 = arith.constant 0 : index
    %c0_0 = arith.constant 0 : index
    %0 = vector.load %arg3[%c0, %c0_0] : memref<4x128xi32, #tpu.memory_space<vmem>>, vector<4x128xi32>
    %c0_1 = arith.constant 0 : index
    %c0_2 = arith.constant 0 : index
    %1 = vector.load %arg4[%c0_1, %c0_2] : memref<4x128xf32, #tpu.memory_space<vmem>>, vector<4x128xf32>
    %2 = tpu.iota {dimensions = array<i32: 0>} : vector<256x128xi32>
    %c256_i32 = arith.constant 256 : i32
    %3 = arith.muli %arg2, %c256_i32 : i32
    %4 = vector.broadcast %3 : i32 to vector<256x128xi32>
    %5 = arith.addi %2, %4 : vector<256x128xi32>
    %cst = arith.constant 0.000000e+00 : f32
    %6 = vector.broadcast %cst : f32 to vector<256x128xf32>
    %7 = vector.extract_strided_slice %0 {offsets = [0, 0], sizes = [1, 128], strides = [1, 1]} : vector<4x128xi32> to vector<1x128xi32>
    %8 = vector.broadcast %7 : vector<1x128xi32> to vector<256x128xi32>
    %9 = arith.cmpi eq, %5, %8 : vector<256x128xi32>
    %10 = vector.extract_strided_slice %1 {offsets = [0, 0], sizes = [1, 128], strides = [1, 1]} : vector<4x128xf32> to vector<1x128xf32>
    %cst_3 = arith.constant 0.000000e+00 : f32
    %11 = vector.shape_cast %10 : vector<1x128xf32> to vector<1x128xf32>
    %12 = vector.broadcast %11 : vector<1x128xf32> to vector<256x128xf32>
    %13 = vector.broadcast %cst_3 : f32 to vector<256x128xf32>
    %14 = arith.select %9, %12, %13 : vector<256x128xi1>, vector<256x128xf32>
    %15 = arith.addf %6, %14 : vector<256x128xf32>
    %16 = vector.extract_strided_slice %0 {offsets = [1, 0], sizes = [1, 128], strides = [1, 1]} : vector<4x128xi32> to vector<1x128xi32>
    %17 = vector.broadcast %16 : vector<1x128xi32> to vector<256x128xi32>
    %18 = arith.cmpi eq, %5, %17 : vector<256x128xi32>
    %19 = vector.extract_strided_slice %1 {offsets = [1, 0], sizes = [1, 128], strides = [1, 1]} : vector<4x128xf32> to vector<1x128xf32>
    %cst_4 = arith.constant 0.000000e+00 : f32
    %20 = vector.shape_cast %19 : vector<1x128xf32> to vector<1x128xf32>
    %21 = vector.broadcast %20 : vector<1x128xf32> to vector<256x128xf32>
    %22 = vector.broadcast %cst_4 : f32 to vector<256x128xf32>
    %23 = arith.select %18, %21, %22 : vector<256x128xi1>, vector<256x128xf32>
    %24 = arith.addf %15, %23 : vector<256x128xf32>
    %25 = vector.extract_strided_slice %0 {offsets = [2, 0], sizes = [1, 128], strides = [1, 1]} : vector<4x128xi32> to vector<1x128xi32>
    %26 = vector.broadcast %25 : vector<1x128xi32> to vector<256x128xi32>
    %27 = arith.cmpi eq, %5, %26 : vector<256x128xi32>
    %28 = vector.extract_strided_slice %1 {offsets = [2, 0], sizes = [1, 128], strides = [1, 1]} : vector<4x128xf32> to vector<1x128xf32>
    %cst_5 = arith.constant 0.000000e+00 : f32
    %29 = vector.shape_cast %28 : vector<1x128xf32> to vector<1x128xf32>
    %30 = vector.broadcast %29 : vector<1x128xf32> to vector<256x128xf32>
    %31 = vector.broadcast %cst_5 : f32 to vector<256x128xf32>
    %32 = arith.select %27, %30, %31 : vector<256x128xi1>, vector<256x128xf32>
    %33 = arith.addf %24, %32 : vector<256x128xf32>
    %34 = vector.extract_strided_slice %0 {offsets = [3, 0], sizes = [1, 128], strides = [1, 1]} : vector<4x128xi32> to vector<1x128xi32>
    %35 = vector.broadcast %34 : vector<1x128xi32> to vector<256x128xi32>
    %36 = arith.cmpi eq, %5, %35 : vector<256x128xi32>
    %37 = vector.extract_strided_slice %1 {offsets = [3, 0], sizes = [1, 128], strides = [1, 1]} : vector<4x128xf32> to vector<1x128xf32>
    %cst_6 = arith.constant 0.000000e+00 : f32
    %38 = vector.shape_cast %37 : vector<1x128xf32> to vector<1x128xf32>
    %39 = vector.broadcast %38 : vector<1x128xf32> to vector<256x128xf32>
    %40 = vector.broadcast %cst_6 : f32 to vector<256x128xf32>
    %41 = arith.select %36, %39, %40 : vector<256x128xi1>, vector<256x128xf32>
    %42 = arith.addf %33, %41 : vector<256x128xf32>
    %43 = arith.truncf %42 : vector<256x128xf32> to vector<256x128xbf16>
    %c0_7 = arith.constant 0 : index
    %c0_8 = arith.constant 0 : index
    %44 = vector.load %arg5[%c0_7, %c0_8] : memref<16x256xbf16, #tpu.memory_space<vmem>>, vector<16x256xbf16>
    %cst_9 = arith.constant dense<0.000000e+00> : vector<16x128xf32>
    %45 = tpu.matmul %44, %43, %cst_9 {dimension_numbers = #tpu.dot_dimension_numbers<[1], [0], [0], [1], [0, 0, 1, 1], [], []>} : vector<16x256xbf16>, vector<256x128xbf16>, vector<16x128xf32> -> vector<16x128xf32>
    %c0_i32 = arith.constant 0 : i32
    %46 = arith.cmpi eq, %arg2, %c0_i32 : i32
    %47 = arith.extui %46 : i1 to i32
    %c0_i32_10 = arith.constant 0 : i32
    %48 = arith.cmpi ne, %47, %c0_i32_10 : i32
    scf.if %48 {
      %c0_13 = arith.constant 0 : index
      %c0_14 = arith.constant 0 : index
      %52 = vector.load %arg6[%c0_13, %c0_14] : memref<16x128xf32, #tpu.memory_space<vmem>>, vector<16x128xf32>
      tpu.vector_store %arg6[%c0_13, %c0_14], %45 {strides = array<i32>} : memref<16x128xf32, #tpu.memory_space<vmem>>, vector<16x128xf32>,
    } else {
    }
    %c0_i32_11 = arith.constant 0 : i32
    %49 = arith.cmpi sgt, %arg2, %c0_i32_11 : i32
    %50 = arith.extui %49 : i1 to i32
    %c0_i32_12 = arith.constant 0 : i32
    %51 = arith.cmpi ne, %50, %c0_i32_12 : i32
    scf.if %51 {
      %c0_13 = arith.constant 0 : index
      %c0_14 = arith.constant 0 : index
      %52 = vector.load %arg6[%c0_13, %c0_14] : memref<16x128xf32, #tpu.memory_space<vmem>>, vector<16x128xf32>
      %53 = arith.addf %52, %45 : vector<16x128xf32>
      %c0_15 = arith.constant 0 : index
      %c0_16 = arith.constant 0 : index
      %54 = vector.load %arg6[%c0_15, %c0_16] : memref<16x128xf32, #tpu.memory_space<vmem>>, vector<16x128xf32>
      tpu.vector_store %arg6[%c0_15, %c0_16], %53 {strides = array<i32>} : memref<16x128xf32, #tpu.memory_space<vmem>>, vector<16x128xf32>,
    } else {
    }
    return
  }
  func.func @transform_0(%arg0: i32, %arg1: i32, %arg2: i32) -> (i32, i32) {
    %c0_i32 = arith.constant 0 : i32
    %c0_i32_0 = arith.constant 0 : i32
    return %c0_i32, %arg1 : i32, i32
  }
  func.func @transform_1(%arg0: i32, %arg1: i32, %arg2: i32) -> (i32, i32) {
    %c0_i32 = arith.constant 0 : i32
    %c0_i32_0 = arith.constant 0 : i32
    return %c0_i32, %arg1 : i32, i32
  }
  func.func @transform_2(%arg0: i32, %arg1: i32, %arg2: i32) -> (i32, i32) {
    %c0_i32 = arith.constant 0 : i32
    %c0_i32_0 = arith.constant 0 : i32
    return %arg0, %c0_i32 : i32, i32
  }
  func.func @transform_3(%arg0: i32, %arg1: i32, %arg2: i32) -> (i32, i32) {
    %c0_i32 = arith.constant 0 : i32
    return %arg0, %arg1 : i32, i32
  }
}

</mosaic_0001>

<bundles_post_ra>
// kernel: tpu_custom_call.1
= control target key start
LH: loop header
LB: loop body
LE: loop exit
PB: predicated region body
PF: predicated region fallthrough
CT: control target
= control target key end

     0   :  { %8 = vsyncpa [#allocation3], 0  ;;  %s1209_s0 = inlined_call_operand.hbm [shape: s32[4,128], index: 0, kind: input, shape index: {}]   ;;  %s1210_s1 = inlined_call_operand.hbm [shape: f32[4,128], index: 1, kind: input, shape index: {}]   ;;  %s1211_s2 = inlined_call_operand.hbm [shape: bf16[16,256], index: 2, kind: input, shape index: {}]   ;;  %s1212_s3 = inlined_call_operand.hbm [shape: f32[16,128], index: 3, kind: output, shape index: {}]  }
   0x1   :  { %9 = vsyncpa [#allocation6], 0 }
   0x2   :  { %10 = vsyncpa [#allocation4], 0  ;;  %s768_s12 = smov [#allocation5]   ;;  %s769_s14 = smov [#allocation2]  }
   0x3   :  { %s27_s13 = sshll.u32 %s768_s12, 4  ;;  %s17_s15 = sshll.u32 %s769_s14, 4  ;;  %s28_s13 = int_to_ptr.vmem [resolvable:$true] %s27_s13  ;;  %s18_s15 = int_to_ptr.vmem [resolvable:$true] %s17_s15 }
   0x4   :  { %s674_s18 = scalar_lea.hbm %s1210_s1, 64 }
   0x5   :  { %p675_p0 = scmp.ne.s32.totalorder %s1210_s1, %s674_s18  ;;  %p678_p1 = scmp.lt.u32.totalorder %s674_s18, %s1210_s1 }
   0x7   :  { %p680_p2 = pnand %p678_p1, %p675_p0 }
   0x9   :  { %683 = shalt.err (!%p680_p2)
}
   0xa   :  { %s684_s23 = scalar_lea.vmem %s28_s13, 64  ;;  %p689_p4 = scmp.lt.s32.totalorder %s28_s13, %s28_s13 }
   0xb   :  { %p685_p3 = scmp.ne.s32.totalorder %s28_s13, %s684_s23  ;;  %p690_p5 = scmp.lt.s32.totalorder %s684_s23, %s684_s23 }
   0xd   :  { %p691_p6 = por %p690_p5, %p689_p4 }
   0xf   :  { %p692_p7 = pnand %p691_p6, %p685_p3 }
  0x11   :  { %695 = shalt.err (!%p692_p7)
}
  0x12   :  { %30 = dma.hbm_to_vmem [thread:$0]  %s1210_s1, 64, %s28_s13, [#allocation6]  }
  0x13   :  { %s696_s28 = scalar_lea.hbm %s1209_s0, 64 }
  0x14   :  { %p697_p8 = scmp.ne.s32.totalorder %s1209_s0, %s696_s28  ;;  %p700_p9 = scmp.lt.u32.totalorder %s696_s28, %s1209_s0 }
  0x16   :  { %p702_p10 = pnand %p700_p9, %p697_p8 }
  0x18   :  { %705 = shalt.err (!%p702_p10)
}
  0x19   :  { %s706_s6 = scalar_lea.vmem %s18_s15, 64  ;;  %p711_p12 = scmp.lt.s32.totalorder %s18_s15, %s18_s15 }
  0x1a   :  { %p707_p11 = scmp.ne.s32.totalorder %s18_s15, %s706_s6  ;;  %p712_p13 = scmp.lt.s32.totalorder %s706_s6, %s706_s6 }
  0x1c   :  { %p713_p0 = por %p712_p13, %p711_p12 }
  0x1e   :  { %p714_p1 = pnand %p713_p0, %p707_p11 }
  0x20   :  { %717 = shalt.err (!%p714_p1)
}
  0x21   :  { %20 = dma.hbm_to_vmem [thread:$0]  %s1209_s0, 64, %s18_s15, [#allocation3]  }
  0x22   :  { %s770_s8 = smov [#allocation7]   ;;  %s718_s12 = scalar_lea.hbm %s1211_s2, 256 }
  0x23   :  { %s36_s9 = sshll.u32 %s770_s8, 4  ;;  %p719_p2 = scmp.ne.s32.totalorder %s1211_s2, %s718_s12  ;;  %s37_s9 = int_to_ptr.vmem [resolvable:$true] %s36_s9 }
  0x24   :  { %p722_p3 = scmp.lt.u32.totalorder %s718_s12, %s1211_s2 }
  0x26   :  { %p724_p4 = pnand %p722_p3, %p719_p2 }
  0x28   :  { %727 = shalt.err (!%p724_p4)
}
  0x29   :  { %s728_s18 = scalar_lea.vmem %s37_s9, 256  ;;  %p733_p6 = scmp.lt.s32.totalorder %s37_s9, %s37_s9 }
  0x2a   :  { %p729_p5 = scmp.ne.s32.totalorder %s37_s9, %s728_s18  ;;  %p734_p7 = scmp.lt.s32.totalorder %s728_s18, %s728_s18 }
  0x2c   :  { %p735_p8 = por %p734_p7, %p733_p6 }
  0x2e   :  { %p736_p9 = pnand %p735_p8, %p729_p5 }
  0x30   :  { %739 = shalt.err (!%p736_p9)
}
  0x31   :  { %s771_s0 = smov 128   ;;  %s772_s15 = smov 8  }
  0x32   :  { %42 = dma.hbm_to_vmem [thread:$0]  %s1211_s2, 256, %s37_s9, [#allocation6], %s771_s0, %s771_s0, %s772_s15  }
  0x33   :  { %762 = dma.done.wait [#allocation3], 64  }
  0x34   :  { %763 = vsyncadd [#allocation3], 4294967232 }
  0x35   :  { %764 = dma.done.wait [#allocation6], 320  }
  0x36   :  { %765 = vsyncadd [#allocation6], 4294966976  ;;  %v55_v0 = vlaneseq  ;;  %v53_v14 = vld [vmem:[#allocation2] sm:$0xf]  ;;  %v54_v15 = vld [vmem:[#allocation5] sm:$0xf] }
  0x37   :  { %v673_v26 = vld [vmem:[#allocation7 + $0x4] ss:$8 sps:$4 sm:$0xff]   ;;  %s773_s2 = smov [#allocation8]  }
  0x38   :  { %v833_v1 = vshrl.u32 %v55_v0, 7  ;;  %598 = vmatprep.mubr.bf16.mxu0 %v673_v26  ;;  %s628_s21 = sshll.u32 %s773_s2, 4  ;;  %s629_s21 = int_to_ptr.vmem [resolvable:$true] %s628_s21 }
  0x39   :  { %s740_s22 = scalar_lea.vmem %s629_s21, 256  ;;  %p745_p11 = scmp.lt.s32.totalorder %s629_s21, %s629_s21 }
  0x3a   :  { %v124_v2 = vsub.s32 0, %v833_v1  ;;  %v228_v3 = vsub.s32 1, %v833_v1  ;;  %v332_v4 = vsub.s32 2, %v833_v1  ;;  %v436_v5 = vsub.s32 3, %v833_v1  ;;  %p741_p10 = scmp.ne.s32.totalorder %s629_s21, %s740_s22  ;;  %p746_p12 = scmp.lt.s32.totalorder %s740_s22, %s740_s22 }
  0x3b   :  { %v72_v6 = vadd.s32 128, %v833_v1  ;;  %v73_v7 = vadd.s32 136, %v833_v1  ;;  %v842_v8 = vadd.s32 8, %v833_v1  ;;  %v845_v9 = vadd.s32 144, %v833_v1 }
  0x3c   :  { %v848_v10 = vadd.s32 152, %v833_v1  ;;  %v851_v11 = vadd.s32 16, %v833_v1  ;;  %v854_v12 = vadd.s32 24, %v833_v1  ;;  %v857_v13 = vadd.s32 160, %v833_v1  ;;  %p747_p13 = por %p746_p12, %p745_p11 }
  0x3d   :  { %v860_v16 = vadd.s32 168, %v833_v1  ;;  %v863_v17 = vadd.s32 32, %v833_v1  ;;  %v865_v18 = vrot.slane %v53_v14, %v124_v2  ;;  %v867_v19 = vrot.slane %v54_v15, %v124_v2 }
  0x3e   :  { %v869_v20 = vrot.slane %v53_v14, %v228_v3  ;;  %v871_v21 = vrot.slane %v54_v15, %v228_v3  ;;  %v873_v22 = vrot.slane %v53_v14, %v332_v4  ;;  %v875_v23 = vrot.slane %v54_v15, %v332_v4  ;;  %p748_p0 = pnand %p747_p13, %p741_p10 }
  0x3f   :  { %v877_v24 = vrot.slane %v53_v14, %v436_v5  ;;  %v879_v25 = vrot.slane %v54_v15, %v436_v5  ;;  %vm142_vm0 = vcmp.eq.s32.totalorder %v72_v6, %v865_v18  ;;  %vm143_vm1 = vcmp.eq.s32.totalorder %v73_v7, %v865_v18 }
  0x40   :  { %vm246_vm2 = vcmp.eq.s32.totalorder %v72_v6, %v869_v20  ;;  %vm247_vm3 = vcmp.eq.s32.totalorder %v73_v7, %v869_v20  ;;  %v178_v27 = vsel %vm142_vm0, %v867_v19, 0.0  ;;  %v179_v28 = vsel %vm143_vm1, %v867_v19, 0.0 }
  0x41   :  { %v282_v29 = vsel %vm246_vm2, %v871_v21, 0.0  ;;  %v283_v30 = vsel %vm247_vm3, %v871_v21, 0.0  ;;  %vm350_vm4 = vcmp.eq.s32.totalorder %v72_v6, %v873_v22  ;;  %vm351_vm5 = vcmp.eq.s32.totalorder %v73_v7, %v873_v22 }
  0x42   :  { %v314_v31 = vadd.f32 %v282_v29, %v178_v27  ;;  %v315_v32 = vadd.f32 %v283_v30, %v179_v28  ;;  %v386_v33 = vsel %vm350_vm4, %v875_v23, 0.0  ;;  %v387_v34 = vsel %vm351_vm5, %v875_v23, 0.0 }
  0x43   :  { %vm454_vm6 = vcmp.eq.s32.totalorder %v72_v6, %v877_v24  ;;  %vm455_vm7 = vcmp.eq.s32.totalorder %v73_v7, %v877_v24  ;;  %vm126_vm8 = vcmp.eq.s32.totalorder %v833_v1, %v865_v18  ;;  %vm127_vm9 = vcmp.eq.s32.totalorder %v842_v8, %v865_v18 }
  0x44   :  { %v418_v35 = vadd.f32 %v386_v33, %v314_v31  ;;  %v419_v36 = vadd.f32 %v387_v34, %v315_v32  ;;  %v490_v37 = vsel %vm454_vm6, %v879_v25, 0.0  ;;  %v491_v38 = vsel %vm455_vm7, %v879_v25, 0.0 }
  0x45   :  { %vm230_vm10 = vcmp.eq.s32.totalorder %v833_v1, %v869_v20  ;;  %vm231_vm11 = vcmp.eq.s32.totalorder %v842_v8, %v869_v20  ;;  %v162_v41 = vsel %vm126_vm8, %v867_v19, 0.0  ;;  %v163_v42 = vsel %vm127_vm9, %v867_v19, 0.0 }
  0x46   :  { %v522_v39 = vadd.f32 %v490_v37, %v418_v35  ;;  %v523_v40 = vadd.f32 %v491_v38, %v419_v36  ;;  %v266_v43 = vsel %vm230_vm10, %v871_v21, 0.0  ;;  %v267_v44 = vsel %vm231_vm11, %v871_v21, 0.0 }
  0x47   :  { %vm334_vm12 = vcmp.eq.s32.totalorder %v833_v1, %v873_v22  ;;  %vm335_vm13 = vcmp.eq.s32.totalorder %v842_v8, %v873_v22  ;;  %v298_v46 = vadd.f32 %v266_v43, %v162_v41  ;;  %v299_v47 = vadd.f32 %v267_v44, %v163_v42 }
  0x48   :  { %v546_v45 = vpack.c.bf16 %v523_v40, %v522_v39  ;;  %v370_v48 = vsel %vm334_vm12, %v875_v23, 0.0  ;;  %v371_v49 = vsel %vm335_vm13, %v875_v23, 0.0  ;;  %vm438_vm14 = vcmp.eq.s32.totalorder %v833_v1, %v877_v24 }
  0x49   :  { %vm439_vm15 = vcmp.eq.s32.totalorder %v842_v8, %v877_v24  ;;  %vm144_vm0 = vcmp.eq.s32.totalorder %v845_v9, %v865_v18  ;;  %v402_v50 = vadd.f32 %v370_v48, %v298_v46  ;;  %v403_v51 = vadd.f32 %v371_v49, %v299_v47 }
  0x4a   :  { %643 = vmatprep.subr.bf16.mxu0 %v546_v45  ;;  %v474_v52 = vsel %vm438_vm14, %v879_v25, 0.0  ;;  %v475_v53 = vsel %vm439_vm15, %v879_v25, 0.0  ;;  %vm145_vm1 = vcmp.eq.s32.totalorder %v848_v10, %v865_v18  ;;  %v180_v54 = vsel %vm144_vm0, %v867_v19, 0.0 }
  0x4b   :  { %vm248_vm2 = vcmp.eq.s32.totalorder %v845_v9, %v869_v20  ;;  %vm249_vm3 = vcmp.eq.s32.totalorder %v848_v10, %v869_v20  ;;  %v506_v55 = vadd.f32 %v474_v52, %v402_v50  ;;  %v507_v56 = vadd.f32 %v475_v53, %v403_v51 }
  0x4c   :  { %v181_v57 = vsel %vm145_vm1, %v867_v19, 0.0  ;;  %v284_v58 = vsel %vm248_vm2, %v871_v21, 0.0  ;;  %v285_v59 = vsel %vm249_vm3, %v871_v21, 0.0  ;;  %vm352_vm4 = vcmp.eq.s32.totalorder %v845_v9, %v873_v22 }
  0x4d   :  { %v316_v60 = vadd.f32 %v284_v58, %v180_v54  ;;  %vm353_vm5 = vcmp.eq.s32.totalorder %v848_v10, %v873_v22  ;;  %v538_v61 = vpack.c.bf16 %v507_v56, %v506_v55  ;;  %v317_v62 = vadd.f32 %v285_v59, %v181_v57 }
  0x4e   :  { %v388_v63 = vsel %vm352_vm4, %v875_v23, 0.0  ;;  %v389_v0 = vsel %vm353_vm5, %v875_v23, 0.0  ;;  %vm456_vm6 = vcmp.eq.s32.totalorder %v845_v9, %v877_v24  ;;  %vm457_vm7 = vcmp.eq.s32.totalorder %v848_v10, %v877_v24 }
  0x4f   :  { %v420_v2 = vadd.f32 %v388_v63, %v316_v60  ;;  %vm128_vm8 = vcmp.eq.s32.totalorder %v851_v11, %v865_v18  ;;  %644 = vmatpush3.bf16.msra.mxu0 %v538_v61  ;;  %v421_v3 = vadd.f32 %v389_v0, %v317_v62  ;;  %v492_v4 = vsel %vm456_vm6, %v879_v25, 0.0 }
  0x50   :  { %v493_v5 = vsel %vm457_vm7, %v879_v25, 0.0  ;;  %vm129_vm9 = vcmp.eq.s32.totalorder %v854_v12, %v865_v18  ;;  %v164_v7 = vsel %vm128_vm8, %v867_v19, 0.0  ;;  %vm232_vm10 = vcmp.eq.s32.totalorder %v851_v11, %v869_v20 }
  0x51   :  { %v524_v6 = vadd.f32 %v492_v4, %v420_v2  ;;  %v165_v8 = vsel %vm129_vm9, %v867_v19, 0.0  ;;  %v525_v9 = vadd.f32 %v493_v5, %v421_v3  ;;  %vm233_vm11 = vcmp.eq.s32.totalorder %v854_v12, %v869_v20 }
  0x52   :  { %v268_v10 = vsel %vm232_vm10, %v871_v21, 0.0  ;;  %vm336_vm12 = vcmp.eq.s32.totalorder %v851_v11, %v873_v22  ;;  %v269_v14 = vsel %vm233_vm11, %v871_v21, 0.0  ;;  %vm337_vm13 = vcmp.eq.s32.totalorder %v854_v12, %v873_v22 }
  0x53   :  { %v300_v15 = vadd.f32 %v268_v10, %v164_v7  ;;  %v372_v26 = vsel %vm336_vm12, %v875_v23, 0.0  ;;  %v547_v27 = vpack.c.bf16 %v525_v9, %v524_v6  ;;  %v301_v28 = vadd.f32 %v269_v14, %v165_v8 }
  0x54   :  { %v373_v29 = vsel %vm337_vm13, %v875_v23, 0.0  ;;  %vm440_vm14 = vcmp.eq.s32.totalorder %v851_v11, %v877_v24  ;;  %vm441_vm15 = vcmp.eq.s32.totalorder %v854_v12, %v877_v24  ;;  %vm146_vm0 = vcmp.eq.s32.totalorder %v857_v13, %v865_v18 }
  0x55   :  { %v404_v30 = vadd.f32 %v372_v26, %v300_v15  ;;  %v476_v31 = vsel %vm440_vm14, %v879_v25, 0.0  ;;  %645 = vmatprep.subr.bf16.mxu0 %v547_v27  ;;  %v405_v32 = vadd.f32 %v373_v29, %v301_v28  ;;  %v477_v33 = vsel %vm441_vm15, %v879_v25, 0.0 }
  0x56   :  { %vm147_vm1 = vcmp.eq.s32.totalorder %v860_v16, %v865_v18  ;;  %v182_v34 = vsel %vm146_vm0, %v867_v19, 0.0  ;;  %vm250_vm2 = vcmp.eq.s32.totalorder %v857_v13, %v869_v20  ;;  %vm251_vm3 = vcmp.eq.s32.totalorder %v860_v16, %v869_v20 }
  0x57   :  { %v508_v35 = vadd.f32 %v476_v31, %v404_v30  ;;  %v183_v11 = vsel %vm147_vm1, %v867_v19, 0.0  ;;  %v509_v12 = vadd.f32 %v477_v33, %v405_v32  ;;  %v286_v36 = vsel %vm250_vm2, %v871_v21, 0.0 }
  0x58   :  { %v287_v37 = vsel %vm251_vm3, %v871_v21, 0.0  ;;  %vm354_vm4 = vcmp.eq.s32.totalorder %v857_v13, %v873_v22  ;;  %v318_v38 = vadd.f32 %v286_v36, %v182_v34  ;;  %vm355_vm5 = vcmp.eq.s32.totalorder %v860_v16, %v873_v22 }
  0x59   :  { %v319_v39 = vadd.f32 %v287_v37, %v183_v11  ;;  %v390_v40 = vsel %vm354_vm4, %v875_v23, 0.0  ;;  %v539_v41 = vpack.c.bf16 %v509_v12, %v508_v35  ;;  %v391_v42 = vsel %vm355_vm5, %v875_v23, 0.0 }
  0x5a   :  { %vm458_vm6 = vcmp.eq.s32.totalorder %v857_v13, %v877_v24  ;;  %vm459_vm7 = vcmp.eq.s32.totalorder %v860_v16, %v877_v24  ;;  %v422_v43 = vadd.f32 %v390_v40, %v318_v38  ;;  %v61_v47 = vadd.s32 40, %v833_v1 }
  0x5b   :  { %v423_v44 = vadd.f32 %v391_v42, %v319_v39  ;;  %v494_v45 = vsel %vm458_vm6, %v879_v25, 0.0  ;;  %v495_v46 = vsel %vm459_vm7, %v879_v25, 0.0  ;;  %646 = vmatpush3.bf16.msra.mxu0 %v539_v41  ;;  %vm130_vm8 = vcmp.eq.s32.totalorder %v863_v17, %v865_v18 }
  0x5c   :  { %vm234_vm9 = vcmp.eq.s32.totalorder %v863_v17, %v869_v20  ;;  %vm338_vm10 = vcmp.eq.s32.totalorder %v863_v17, %v873_v22  ;;  %v526_v13 = vadd.f32 %v494_v45, %v422_v43  ;;  %v166_v48 = vsel %vm130_vm8, %v867_v19, 0.0 }
  0x5d   :  { %v527_v16 = vadd.f32 %v495_v46, %v423_v44  ;;  %v270_v49 = vsel %vm234_vm9, %v871_v21, 0.0  ;;  %vm131_vm11 = vcmp.eq.s32.totalorder %v61_v47, %v865_v18  ;;  %vm235_vm12 = vcmp.eq.s32.totalorder %v61_v47, %v869_v20 }
  0x5e   :  { %v302_v50 = vadd.f32 %v270_v49, %v166_v48  ;;  %vm339_vm13 = vcmp.eq.s32.totalorder %v61_v47, %v873_v22  ;;  %v167_v52 = vsel %vm131_vm11, %v867_v19, 0.0  ;;  %v271_v53 = vsel %vm235_vm12, %v871_v21, 0.0 }
  0x5f   :  { %v548_v51 = vpack.c.bf16 %v527_v16, %v526_v13  ;;  %v374_v54 = vsel %vm338_vm10, %v875_v23, 0.0  ;;  %v303_v55 = vadd.f32 %v271_v53, %v167_v52  ;;  %v375_v56 = vsel %vm339_vm13, %v875_v23, 0.0 }
  0x60   :  { %v406_v57 = vadd.f32 %v374_v54, %v302_v50  ;;  %vm442_vm14 = vcmp.eq.s32.totalorder %v863_v17, %v877_v24  ;;  %vm443_vm15 = vcmp.eq.s32.totalorder %v61_v47, %v877_v24  ;;  %v78_v59 = vadd.s32 176, %v833_v1 }
  0x61   :  { %647 = vmatprep.subr.bf16.mxu0 %v548_v51  ;;  %v478_v58 = vsel %vm442_vm14, %v879_v25, 0.0  ;;  %v79_v60 = vadd.s32 184, %v833_v1  ;;  %v407_v61 = vadd.f32 %v375_v56, %v303_v55  ;;  %v479_v62 = vsel %vm443_vm15, %v879_v25, 0.0 }
  0x62   :  { %v510_v63 = vadd.f32 %v478_v58, %v406_v57  ;;  %v62_v0 = vadd.s32 48, %v833_v1  ;;  %vm148_vm0 = vcmp.eq.s32.totalorder %v78_v59, %v865_v18  ;;  %vm252_vm2 = vcmp.eq.s32.totalorder %v78_v59, %v869_v20 }
  0x63   :  { %vm149_vm1 = vcmp.eq.s32.totalorder %v79_v60, %v865_v18  ;;  %vm253_vm3 = vcmp.eq.s32.totalorder %v79_v60, %v869_v20  ;;  %v511_v17 = vadd.f32 %v479_v62, %v407_v61  ;;  %v184_v2 = vsel %vm148_vm0, %v867_v19, 0.0 }
  0x64   :  { %v185_v3 = vsel %vm149_vm1, %v867_v19, 0.0  ;;  %v288_v4 = vsel %vm252_vm2, %v871_v21, 0.0  ;;  %v289_v5 = vsel %vm253_vm3, %v871_v21, 0.0  ;;  %vm356_vm4 = vcmp.eq.s32.totalorder %v78_v59, %v873_v22 }
  0x65   :  { %v320_v6 = vadd.f32 %v288_v4, %v184_v2  ;;  %vm357_vm5 = vcmp.eq.s32.totalorder %v79_v60, %v873_v22  ;;  %v540_v7 = vpack.c.bf16 %v511_v17, %v510_v63  ;;  %v321_v8 = vadd.f32 %v289_v5, %v185_v3 }
  0x66   :  { %v392_v9 = vsel %vm356_vm4, %v875_v23, 0.0  ;;  %v393_v10 = vsel %vm357_vm5, %v875_v23, 0.0  ;;  %vm460_vm6 = vcmp.eq.s32.totalorder %v78_v59, %v877_v24  ;;  %vm461_vm7 = vcmp.eq.s32.totalorder %v79_v60, %v877_v24 }
  0x67   :  { %v424_v14 = vadd.f32 %v392_v9, %v320_v6  ;;  %v63_v15 = vadd.s32 56, %v833_v1  ;;  %648 = vmatpush3.bf16.msra.mxu0 %v540_v7  ;;  %v425_v26 = vadd.f32 %v393_v10, %v321_v8  ;;  %v496_v27 = vsel %vm460_vm6, %v879_v25, 0.0 }
  0x68   :  { %v497_v28 = vsel %vm461_vm7, %v879_v25, 0.0  ;;  %vm132_vm8 = vcmp.eq.s32.totalorder %v62_v0, %v865_v18  ;;  %vm236_vm10 = vcmp.eq.s32.totalorder %v62_v0, %v869_v20  ;;  %vm340_vm12 = vcmp.eq.s32.totalorder %v62_v0, %v873_v22 }
  0x69   :  { %v528_v29 = vadd.f32 %v496_v27, %v424_v14  ;;  %vm133_vm9 = vcmp.eq.s32.totalorder %v63_v15, %v865_v18  ;;  %v168_v30 = vsel %vm132_vm8, %v867_v19, 0.0  ;;  %v529_v31 = vadd.f32 %v497_v28, %v425_v26 }
  0x6a   :  { %v169_v32 = vsel %vm133_vm9, %v867_v19, 0.0  ;;  %vm237_vm11 = vcmp.eq.s32.totalorder %v63_v15, %v869_v20  ;;  %v272_v33 = vsel %vm236_vm10, %v871_v21, 0.0  ;;  %vm341_vm13 = vcmp.eq.s32.totalorder %v63_v15, %v873_v22 }
  0x6b   :  { %v273_v34 = vsel %vm237_vm11, %v871_v21, 0.0  ;;  %v304_v35 = vadd.f32 %v272_v33, %v168_v30  ;;  %v549_v11 = vpack.c.bf16 %v529_v31, %v528_v29  ;;  %v376_v36 = vsel %vm340_vm12, %v875_v23, 0.0 }
  0x6c   :  { %v305_v12 = vadd.f32 %v273_v34, %v169_v32  ;;  %v377_v37 = vsel %vm341_vm13, %v875_v23, 0.0  ;;  %vm444_vm14 = vcmp.eq.s32.totalorder %v62_v0, %v877_v24  ;;  %vm445_vm15 = vcmp.eq.s32.totalorder %v63_v15, %v877_v24 }
  0x6d   :  { %v408_v38 = vadd.f32 %v376_v36, %v304_v35  ;;  %v80_v39 = vadd.s32 192, %v833_v1  ;;  %649 = vmatprep.subr.bf16.mxu0 %v549_v11  ;;  %v480_v41 = vsel %vm444_vm14, %v879_v25, 0.0  ;;  %v481_v42 = vsel %vm445_vm15, %v879_v25, 0.0 }
  0x6e   :  { %v409_v40 = vadd.f32 %v377_v37, %v305_v12  ;;  %v81_v43 = vadd.s32 200, %v833_v1  ;;  %v64_v53 = vadd.s32 64, %v833_v1  ;;  %v65_v58 = vadd.s32 72, %v833_v1 }
  0x6f   :  { %v512_v44 = vadd.f32 %v480_v41, %v408_v38  ;;  %vm150_vm0 = vcmp.eq.s32.totalorder %v80_v39, %v865_v18  ;;  %vm254_vm1 = vcmp.eq.s32.totalorder %v80_v39, %v869_v20  ;;  %vm358_vm2 = vcmp.eq.s32.totalorder %v80_v39, %v873_v22 }
  0x70   :  { %v513_v45 = vadd.f32 %v481_v42, %v409_v40  ;;  %vm151_vm3 = vcmp.eq.s32.totalorder %v81_v43, %v865_v18  ;;  %v186_v46 = vsel %vm150_vm0, %v867_v19, 0.0  ;;  %vm255_vm4 = vcmp.eq.s32.totalorder %v81_v43, %v869_v20 }
  0x71   :  { %v187_v47 = vsel %vm151_vm3, %v867_v19, 0.0  ;;  %v290_v13 = vsel %vm254_vm1, %v871_v21, 0.0  ;;  %v291_v16 = vsel %vm255_vm4, %v871_v21, 0.0  ;;  %vm359_vm5 = vcmp.eq.s32.totalorder %v81_v43, %v873_v22 }
  0x72   :  { %v541_v48 = vpack.c.bf16 %v513_v45, %v512_v44  ;;  %v322_v49 = vadd.f32 %v290_v13, %v186_v46  ;;  %v323_v50 = vadd.f32 %v291_v16, %v187_v47  ;;  %v394_v51 = vsel %vm358_vm2, %v875_v23, 0.0 }
  0x73   :  { %v395_v52 = vsel %vm359_vm5, %v875_v23, 0.0  ;;  %vm462_vm6 = vcmp.eq.s32.totalorder %v80_v39, %v877_v24  ;;  %vm463_vm7 = vcmp.eq.s32.totalorder %v81_v43, %v877_v24  ;;  %vm134_vm8 = vcmp.eq.s32.totalorder %v64_v53, %v865_v18 }
  0x74   :  { %650 = vmatpush3.bf16.msra.mxu0 %v541_v48  ;;  %v426_v54 = vadd.f32 %v394_v51, %v322_v49  ;;  %v427_v55 = vadd.f32 %v395_v52, %v323_v50  ;;  %v498_v56 = vsel %vm462_vm6, %v879_v25, 0.0  ;;  %v499_v57 = vsel %vm463_vm7, %v879_v25, 0.0 }
  0x75   :  { %vm238_vm9 = vcmp.eq.s32.totalorder %v64_v53, %v869_v20  ;;  %vm342_vm10 = vcmp.eq.s32.totalorder %v64_v53, %v873_v22  ;;  %v170_v61 = vsel %vm134_vm8, %v867_v19, 0.0  ;;  %vm135_vm11 = vcmp.eq.s32.totalorder %v65_v58, %v865_v18 }
  0x76   :  { %v530_v59 = vadd.f32 %v498_v56, %v426_v54  ;;  %v531_v60 = vadd.f32 %v499_v57, %v427_v55  ;;  %v274_v62 = vsel %vm238_vm9, %v871_v21, 0.0  ;;  %vm239_vm12 = vcmp.eq.s32.totalorder %v65_v58, %v869_v20 }
  0x77   :  { %v306_v63 = vadd.f32 %v274_v62, %v170_v61  ;;  %vm343_vm13 = vcmp.eq.s32.totalorder %v65_v58, %v873_v22  ;;  %v171_v17 = vsel %vm135_vm11, %v867_v19, 0.0  ;;  %v275_v2 = vsel %vm239_vm12, %v871_v21, 0.0 }
  0x78   :  { %v550_v0 = vpack.c.bf16 %v531_v60, %v530_v59  ;;  %v378_v3 = vsel %vm342_vm10, %v875_v23, 0.0  ;;  %v307_v4 = vadd.f32 %v275_v2, %v171_v17  ;;  %v379_v5 = vsel %vm343_vm13, %v875_v23, 0.0 }
  0x79   :  { %v410_v6 = vadd.f32 %v378_v3, %v306_v63  ;;  %vm446_vm14 = vcmp.eq.s32.totalorder %v64_v53, %v877_v24  ;;  %vm447_vm15 = vcmp.eq.s32.totalorder %v65_v58, %v877_v24  ;;  %v82_v8 = vadd.s32 208, %v833_v1 }
  0x7a   :  { %651 = vmatprep.subr.bf16.mxu0 %v550_v0  ;;  %v482_v7 = vsel %vm446_vm14, %v879_v25, 0.0  ;;  %v83_v9 = vadd.s32 216, %v833_v1  ;;  %v411_v10 = vadd.f32 %v379_v5, %v307_v4  ;;  %v483_v14 = vsel %vm447_vm15, %v879_v25, 0.0 }
  0x7b   :  { %v514_v15 = vadd.f32 %v482_v7, %v410_v6  ;;  %v66_v26 = vadd.s32 80, %v833_v1  ;;  %vm152_vm0 = vcmp.eq.s32.totalorder %v82_v8, %v865_v18  ;;  %vm256_vm2 = vcmp.eq.s32.totalorder %v82_v8, %v869_v20 }
  0x7c   :  { %vm153_vm1 = vcmp.eq.s32.totalorder %v83_v9, %v865_v18  ;;  %vm257_vm3 = vcmp.eq.s32.totalorder %v83_v9, %v869_v20  ;;  %v515_v27 = vadd.f32 %v483_v14, %v411_v10  ;;  %v188_v28 = vsel %vm152_vm0, %v867_v19, 0.0 }
  0x7d   :  { %v189_v29 = vsel %vm153_vm1, %v867_v19, 0.0  ;;  %v292_v30 = vsel %vm256_vm2, %v871_v21, 0.0  ;;  %v293_v31 = vsel %vm257_vm3, %v871_v21, 0.0  ;;  %vm360_vm4 = vcmp.eq.s32.totalorder %v82_v8, %v873_v22 }
  0x7e   :  { %v324_v32 = vadd.f32 %v292_v30, %v188_v28  ;;  %vm361_vm5 = vcmp.eq.s32.totalorder %v83_v9, %v873_v22  ;;  %v542_v33 = vpack.c.bf16 %v515_v27, %v514_v15  ;;  %v325_v34 = vadd.f32 %v293_v31, %v189_v29 }
  0x7f   :  { %v396_v35 = vsel %vm360_vm4, %v875_v23, 0.0  ;;  %v397_v11 = vsel %vm361_vm5, %v875_v23, 0.0  ;;  %vm464_vm6 = vcmp.eq.s32.totalorder %v82_v8, %v877_v24  ;;  %vm465_vm7 = vcmp.eq.s32.totalorder %v83_v9, %v877_v24 }
  0x80   :  { %v428_v12 = vadd.f32 %v396_v35, %v324_v32  ;;  %v67_v36 = vadd.s32 88, %v833_v1  ;;  %652 = vmatpush3.bf16.msra.mxu0 %v542_v33  ;;  %v429_v37 = vadd.f32 %v397_v11, %v325_v34  ;;  %v500_v38 = vsel %vm464_vm6, %v879_v25, 0.0 }
  0x81   :  { %v501_v39 = vsel %vm465_vm7, %v879_v25, 0.0  ;;  %vm136_vm8 = vcmp.eq.s32.totalorder %v66_v26, %v865_v18  ;;  %vm240_vm10 = vcmp.eq.s32.totalorder %v66_v26, %v869_v20  ;;  %vm344_vm12 = vcmp.eq.s32.totalorder %v66_v26, %v873_v22 }
  0x82   :  { %v532_v40 = vadd.f32 %v500_v38, %v428_v12  ;;  %vm137_vm9 = vcmp.eq.s32.totalorder %v67_v36, %v865_v18  ;;  %v172_v41 = vsel %vm136_vm8, %v867_v19, 0.0  ;;  %v533_v42 = vadd.f32 %v501_v39, %v429_v37 }
  0x83   :  { %v173_v43 = vsel %vm137_vm9, %v867_v19, 0.0  ;;  %vm241_vm11 = vcmp.eq.s32.totalorder %v67_v36, %v869_v20  ;;  %v276_v44 = vsel %vm240_vm10, %v871_v21, 0.0  ;;  %vm345_vm13 = vcmp.eq.s32.totalorder %v67_v36, %v873_v22 }
  0x84   :  { %v277_v45 = vsel %vm241_vm11, %v871_v21, 0.0  ;;  %v308_v46 = vadd.f32 %v276_v44, %v172_v41  ;;  %v551_v47 = vpack.c.bf16 %v533_v42, %v532_v40  ;;  %v380_v16 = vsel %vm344_vm12, %v875_v23, 0.0 }
  0x85   :  { %v309_v13 = vadd.f32 %v277_v45, %v173_v43  ;;  %v381_v48 = vsel %vm345_vm13, %v875_v23, 0.0  ;;  %vm448_vm14 = vcmp.eq.s32.totalorder %v66_v26, %v877_v24  ;;  %vm449_vm15 = vcmp.eq.s32.totalorder %v67_v36, %v877_v24 }
  0x86   :  { %v412_v49 = vadd.f32 %v380_v16, %v308_v46  ;;  %v84_v50 = vadd.s32 224, %v833_v1  ;;  %653 = vmatprep.subr.bf16.mxu0 %v551_v47  ;;  %v484_v52 = vsel %vm448_vm14, %v879_v25, 0.0  ;;  %v485_v53 = vsel %vm449_vm15, %v879_v25, 0.0 }
  0x87   :  { %v413_v51 = vadd.f32 %v381_v48, %v309_v13  ;;  %v85_v54 = vadd.s32 232, %v833_v1  ;;  %v68_v2 = vadd.s32 96, %v833_v1  ;;  %v69_v7 = vadd.s32 104, %v833_v1 }
  0x88   :  { %v516_v55 = vadd.f32 %v484_v52, %v412_v49  ;;  %vm154_vm0 = vcmp.eq.s32.totalorder %v84_v50, %v865_v18  ;;  %vm258_vm1 = vcmp.eq.s32.totalorder %v84_v50, %v869_v20  ;;  %vm362_vm2 = vcmp.eq.s32.totalorder %v84_v50, %v873_v22 }
  0x89   :  { %v517_v56 = vadd.f32 %v485_v53, %v413_v51  ;;  %vm155_vm3 = vcmp.eq.s32.totalorder %v85_v54, %v865_v18  ;;  %v190_v57 = vsel %vm154_vm0, %v867_v19, 0.0  ;;  %vm259_vm4 = vcmp.eq.s32.totalorder %v85_v54, %v869_v20 }
  0x8a   :  { %v191_v58 = vsel %vm155_vm3, %v867_v19, 0.0  ;;  %v294_v59 = vsel %vm258_vm1, %v871_v21, 0.0  ;;  %v295_v60 = vsel %vm259_vm4, %v871_v21, 0.0  ;;  %vm363_vm5 = vcmp.eq.s32.totalorder %v85_v54, %v873_v22 }
  0x8b   :  { %v543_v61 = vpack.c.bf16 %v517_v56, %v516_v55  ;;  %v326_v62 = vadd.f32 %v294_v59, %v190_v57  ;;  %v327_v63 = vadd.f32 %v295_v60, %v191_v58  ;;  %v398_v0 = vsel %vm362_vm2, %v875_v23, 0.0 }
  0x8c   :  { %v399_v17 = vsel %vm363_vm5, %v875_v23, 0.0  ;;  %vm466_vm6 = vcmp.eq.s32.totalorder %v84_v50, %v877_v24  ;;  %vm467_vm7 = vcmp.eq.s32.totalorder %v85_v54, %v877_v24  ;;  %vm138_vm8 = vcmp.eq.s32.totalorder %v68_v2, %v865_v18 }
  0x8d   :  { %654 = vmatpush3.bf16.msra.mxu0 %v543_v61  ;;  %v430_v3 = vadd.f32 %v398_v0, %v326_v62  ;;  %v431_v4 = vadd.f32 %v399_v17, %v327_v63  ;;  %v502_v5 = vsel %vm466_vm6, %v879_v25, 0.0  ;;  %v503_v6 = vsel %vm467_vm7, %v879_v25, 0.0  ;;  %v671_v63 = vld [vmem:[#allocation7] ss:$8 sps:$4 sm:$0xff]  }
  0x8e   :  { %vm242_vm9 = vcmp.eq.s32.totalorder %v68_v2, %v869_v20  ;;  %vm346_vm10 = vcmp.eq.s32.totalorder %v68_v2, %v873_v22  ;;  %v174_v10 = vsel %vm138_vm8, %v867_v19, 0.0  ;;  %vm139_vm11 = vcmp.eq.s32.totalorder %v69_v7, %v865_v18 }
  0x8f   :  { %v534_v8 = vadd.f32 %v502_v5, %v430_v3  ;;  %v535_v9 = vadd.f32 %v503_v6, %v431_v4  ;;  %v278_v14 = vsel %vm242_vm9, %v871_v21, 0.0  ;;  %vm243_vm12 = vcmp.eq.s32.totalorder %v69_v7, %v869_v20 }
  0x90   :  { %v310_v15 = vadd.f32 %v278_v14, %v174_v10  ;;  %vm347_vm13 = vcmp.eq.s32.totalorder %v69_v7, %v873_v22  ;;  %v175_v27 = vsel %vm139_vm11, %v867_v19, 0.0  ;;  %v279_v28 = vsel %vm243_vm12, %v871_v21, 0.0 }
  0x91   :  { %v552_v26 = vpack.c.bf16 %v535_v9, %v534_v8  ;;  %v382_v29 = vsel %vm346_vm10, %v875_v23, 0.0  ;;  %v311_v30 = vadd.f32 %v279_v28, %v175_v27  ;;  %v383_v31 = vsel %vm347_vm13, %v875_v23, 0.0 }
  0x92   :  { %v414_v32 = vadd.f32 %v382_v29, %v310_v15  ;;  %vm450_vm14 = vcmp.eq.s32.totalorder %v68_v2, %v877_v24  ;;  %vm451_vm15 = vcmp.eq.s32.totalorder %v69_v7, %v877_v24  ;;  %v86_v34 = vadd.s32 240, %v833_v1 }
  0x93   :  { %655 = vmatprep.subr.bf16.mxu0 %v552_v26  ;;  %v486_v33 = vsel %vm450_vm14, %v879_v25, 0.0  ;;  %v87_v35 = vadd.s32 248, %v833_v1  ;;  %v415_v11 = vadd.f32 %v383_v31, %v311_v30  ;;  %v487_v12 = vsel %vm451_vm15, %v879_v25, 0.0 }
  0x94   :  { %v518_v36 = vadd.f32 %v486_v33, %v414_v32  ;;  %v70_v37 = vadd.s32 112, %v833_v1  ;;  %vm156_vm0 = vcmp.eq.s32.totalorder %v86_v34, %v865_v18  ;;  %vm260_vm2 = vcmp.eq.s32.totalorder %v86_v34, %v869_v20 }
  0x95   :  { %vm157_vm1 = vcmp.eq.s32.totalorder %v87_v35, %v865_v18  ;;  %vm261_vm3 = vcmp.eq.s32.totalorder %v87_v35, %v869_v20  ;;  %v519_v38 = vadd.f32 %v487_v12, %v415_v11  ;;  %v192_v39 = vsel %vm156_vm0, %v867_v19, 0.0 }
  0x96   :  { %v193_v40 = vsel %vm157_vm1, %v867_v19, 0.0  ;;  %v296_v41 = vsel %vm260_vm2, %v871_v21, 0.0  ;;  %v297_v42 = vsel %vm261_vm3, %v871_v21, 0.0  ;;  %vm364_vm4 = vcmp.eq.s32.totalorder %v86_v34, %v873_v22 }
  0x97   :  { %v328_v43 = vadd.f32 %v296_v41, %v192_v39  ;;  %vm365_vm5 = vcmp.eq.s32.totalorder %v87_v35, %v873_v22  ;;  %v544_v44 = vpack.c.bf16 %v519_v38, %v518_v36  ;;  %v329_v45 = vadd.f32 %v297_v42, %v193_v40 }
  0x98   :  { %v400_v46 = vsel %vm364_vm4, %v875_v23, 0.0  ;;  %v401_v47 = vsel %vm365_vm5, %v875_v23, 0.0  ;;  %vm468_vm6 = vcmp.eq.s32.totalorder %v86_v34, %v877_v24  ;;  %vm469_vm7 = vcmp.eq.s32.totalorder %v87_v35, %v877_v24 }
  0x99   :  { %v432_v13 = vadd.f32 %v400_v46, %v328_v43  ;;  %v71_v16 = vadd.s32 120, %v833_v1  ;;  %656 = vmatpush3.bf16.msra.mxu0 %v544_v44  ;;  %v433_v48 = vadd.f32 %v401_v47, %v329_v45  ;;  %v504_v49 = vsel %vm468_vm6, %v879_v25, 0.0 }
  0x9a   :  { %v505_v50 = vsel %vm469_vm7, %v879_v25, 0.0  ;;  %vm140_vm8 = vcmp.eq.s32.totalorder %v70_v37, %v865_v18  ;;  %vm244_vm10 = vcmp.eq.s32.totalorder %v70_v37, %v869_v20  ;;  %vm348_vm12 = vcmp.eq.s32.totalorder %v70_v37, %v873_v22 }
  0x9b   :  { %v536_v51 = vadd.f32 %v504_v49, %v432_v13  ;;  %vm141_vm9 = vcmp.eq.s32.totalorder %v71_v16, %v865_v18  ;;  %v176_v52 = vsel %vm140_vm8, %v867_v19, 0.0  ;;  %v537_v53 = vadd.f32 %v505_v50, %v433_v48 }
  0x9c   :  { %v177_v54 = vsel %vm141_vm9, %v867_v19, 0.0  ;;  %vm245_vm11 = vcmp.eq.s32.totalorder %v71_v16, %v869_v20  ;;  %v280_v1 = vsel %vm244_vm10, %v871_v21, 0.0  ;;  %vm349_vm13 = vcmp.eq.s32.totalorder %v71_v16, %v873_v22 }
  0x9d   :  { %v281_v55 = vsel %vm245_vm11, %v871_v21, 0.0  ;;  %v312_v56 = vadd.f32 %v280_v1, %v176_v52  ;;  %v553_v57 = vpack.c.bf16 %v537_v53, %v536_v51  ;;  %v384_v58 = vsel %vm348_vm12, %v875_v23, 0.0 }
  0x9e   :  { %v313_v18 = vadd.f32 %v281_v55, %v177_v54  ;;  %v385_v59 = vsel %vm349_vm13, %v875_v23, 0.0  ;;  %vm452_vm14 = vcmp.eq.s32.totalorder %v70_v37, %v877_v24  ;;  %vm453_vm15 = vcmp.eq.s32.totalorder %v71_v16, %v877_v24 }
  0x9f   :  { %v416_v60 = vadd.f32 %v384_v58, %v312_v56  ;;  %657 = vmatprep.subr.bf16.mxu0 %v553_v57  ;;  %v488_v20 = vsel %vm452_vm14, %v879_v25, 0.0  ;;  %v489_v21 = vsel %vm453_vm15, %v879_v25, 0.0 }
  0xa0   :  { %v417_v19 = vadd.f32 %v385_v59, %v313_v18 }
  0xa1   :  { %v520_v61 = vadd.f32 %v488_v20, %v416_v60 }
  0xa2   :  { %v521_v62 = vadd.f32 %v489_v21, %v417_v19 }
  0xa4   :  { %v545_v22 = vpack.c.bf16 %v521_v62, %v520_v61 }
  0xa6   :  { %658 = vmatpush3.bf16.msra.mxu0 %v545_v22 }
  0xa9   :  { %599 = vmatmul.mubr.bf16.vlgmr.msra.gmra.mrb[0].mxu0 %v671_v63 }
 0x17c   :  { %v659_v0 = vpop.f32.mrb[0].mxu0 }
 0x17d   :  { %v660_v17 = vpop.f32.mrb[1].mxu0 }
 0x17e   :  { %v661_v23 = vadd.f32 %v660_v17, %v659_v0  ;;  %v662_v2 = vpop.f32.mrb[2].mxu0 }
 0x17f   :  { %v663_v3 = vpop.f32.mrb[3].mxu0 }
 0x180   :  { %611 = vst [vmem:[#allocation8] sm:$0xff] %v661_v23  ;;  %v664_v24 = vadd.f32 %v663_v3, %v662_v2 }
 0x182   :  { %612 = vst [vmem:[#allocation8 + $0x8] sm:$0xff] %v664_v24 }
 0x183   :  { %751 = shalt.err (!%p748_p0)
}
 0x184   :  { %s752_s25 = scalar_lea.hbm %s1212_s3, 256 }
 0x185   :  { %p753_p1 = scmp.ne.s32.totalorder %s1212_s3, %s752_s25  ;;  %p756_p2 = scmp.lt.u32.totalorder %s752_s25, %s1212_s3 }
 0x187   :  { %p758_p3 = pnand %p756_p2, %p753_p1 }
 0x189   :  { %761 = shalt.err (!%p758_p3)
}
 0x18a   :  { %634 = dma.vmem_to_hbm [thread:$0]  %s629_s21, 256, %s1212_s3, [#allocation4], %s771_s0, %s771_s0, %s772_s15  }
 0x18b   :  { %766 = dma.done.wait [#allocation4], 256  }
 0x18c   :  { %767 = vsyncadd [#allocation4], 4294967040 }
 0x18d   :  { %638 = vsyncpa [#allocation3], 1 }
 0x18e   :  { %639 = vsyncpa [#allocation6], 1 }
 0x18f   :  { %640 = vsyncpa [#allocation4], 1 }

</bundles_post_ra>
